<compile_context>
chip_gen: v7x
topology: tpu7x:2x2x1
jax: 0.10.0
libtpu: 0.0.40
codegen_flags: <defaults>
</compile_context>

<pallas_src>
import functools
import math

import jax
import jax.numpy as jnp
from jax.experimental import pallas as pl
from jax.experimental.pallas import tpu as pltpu


NEG_INF = -1e30  # finite mask value: avoids exp(-inf - (-inf)) NaNs


# ---------------------------------------------------------------------------
# In-kernel helpers (trace into the Pallas kernel bodies, all math in f32)
# ---------------------------------------------------------------------------
def _layer_norm_f32(x, gamma, beta, eps=1e-5):
    inv_d = 1.0 / x.shape[-1]
    mu = jnp.sum(x, axis=-1, keepdims=True) * inv_d
    xc = x - mu
    var = jnp.sum(xc * xc, axis=-1, keepdims=True) * inv_d
    return xc * jax.lax.rsqrt(var + eps) * gamma + beta


def _gelu_exact(x):
    # torch.nn.GELU default = exact erf formulation
    return 0.5 * x * (1.0 + jax.lax.erf(x * (1.0 / math.sqrt(2.0))))


# ---------------------------------------------------------------------------
# Kernel 1: fused LayerNorm + QKV projection, head split on store
# ---------------------------------------------------------------------------
def qkv_kernel(x_ref, g_ref, b_ref, w_ref, q_ref, k_ref, v_ref,
               *, heads, compute_dtype):
    x = x_ref[0].astype(jnp.float32)                       # (tq, D)
    D = x.shape[-1]
    hd = D // heads
    xn = _layer_norm_f32(x, g_ref[0], b_ref[0]).astype(compute_dtype)
    # bf16 @ bf16 -> f32 accumulation on the MXU
    qkv = jnp.dot(xn, w_ref[...], preferred_element_type=jnp.float32)  # (tq, 3D)
    for h in range(heads):                                 # static, store-only split
        q_ref[0, h] = qkv[:, h * hd:(h + 1) * hd].astype(q_ref.dtype)
        k_ref[0, h] = qkv[:, D + h * hd:D + (h + 1) * hd].astype(k_ref.dtype)
        v_ref[0, h] = qkv[:, 2 * D + h * hd:2 * D + (h + 1) * hd].astype(v_ref.dtype)


# ---------------------------------------------------------------------------
# Kernel 2: flash attention (online softmax over KV tiles) + fused epilogue
#           (out_proj + residual + FFN + residual + final LayerNorm)
# ---------------------------------------------------------------------------
def attn_ffn_kernel(
    x_ref, q_ref, k_ref, v_ref,
    wo_ref, ob_ref,
    fg_ref, fb_ref, w1_ref, b1_ref, w2_ref, b2_ref,
    ng_ref, nb_ref,
    o_ref,
    m_sc, l_sc, acc_sc,
    *, causal, compute_dtype,
):
    qi = pl.program_id(1)
    ki = pl.program_id(2)
    heads = q_ref.shape[1]
    tq = q_ref.shape[2]
    tkv = k_ref.shape[2]
    hd = q_ref.shape[3]
    scale = 1.0 / math.sqrt(hd)

    @pl.when(ki == 0)
    def _init():
        m_sc[...] = jnp.full_like(m_sc, NEG_INF)
        l_sc[...] = jnp.zeros_like(l_sc)
        acc_sc[...] = jnp.zeros_like(acc_sc)

    def _accumulate():
        q = q_ref[0]                                       # (heads, tq, hd) bf16
        k = k_ref[0]                                       # (heads, tkv, hd) bf16
        v = v_ref[0]                                       # (heads, tkv, hd) bf16
        # batched over heads, f32 accumulation
        s = jnp.einsum("hqd,hkd->hqk", q, k,
                       preferred_element_type=jnp.float32) * scale
        if causal:
            row = qi * tq + jax.lax.broadcasted_iota(jnp.int32, s.shape, 1)
            col = ki * tkv + jax.lax.broadcasted_iota(jnp.int32, s.shape, 2)
            s = jnp.where(col <= row, s, NEG_INF)
        m_prev = m_sc[...]
        m_new = jnp.maximum(m_prev, jnp.max(s, axis=-1, keepdims=True))
        alpha = jnp.exp(m_prev - m_new)
        p = jnp.exp(s - m_new)
        l_sc[...] = alpha * l_sc[...] + jnp.sum(p, axis=-1, keepdims=True)
        acc_sc[...] = alpha * acc_sc[...] + jnp.einsum(
            "hqk,hkd->hqd", p.astype(compute_dtype), v,
            preferred_element_type=jnp.float32)
        m_sc[...] = m_new

    if causal:
        # skip KV tiles entirely above the diagonal (fully masked)
        @pl.when(ki * tkv < (qi + 1) * tq)
        def _():
            _accumulate()
    else:
        _accumulate()

    @pl.when(ki == pl.num_programs(2) - 1)
    def _epilogue():
        inv_l = pl.reciprocal(l_sc[...], approx=True)       # (heads, tq, 1), EUP
        attn = (acc_sc[...] * inv_l).astype(compute_dtype)  # (heads, tq, hd)
        # out_proj with the weight pre-reshaped to (heads, hd, D): batch over
        # heads on the MXU, then a cheap reduce over the leading head axis.
        ctx = jnp.einsum("hqd,hdo->hqo", attn, wo_ref[...],
                         preferred_element_type=jnp.float32)  # (heads, tq, D)
        y = jnp.sum(ctx, axis=0) + ob_ref[0]                  # (tq, D) f32
        x = x_ref[0].astype(jnp.float32)
        x1 = y + x                                            # residual 1

        yn = _layer_norm_f32(x1, fg_ref[0], fb_ref[0]).astype(compute_dtype)
        h1 = jnp.dot(yn, w1_ref[...],
                     preferred_element_type=jnp.float32) + b1_ref[0]
        h1 = _gelu_exact(h1).astype(compute_dtype)
        ff = jnp.dot(h1, w2_ref[...],
                     preferred_element_type=jnp.float32) + b2_ref[0]
        x2 = ff + x1                                          # residual 2

        out = _layer_norm_f32(x2, ng_ref[0], nb_ref[0])
        o_ref[0] = out.astype(o_ref.dtype)


# ---------------------------------------------------------------------------
# Wrapper
# ---------------------------------------------------------------------------
def layer_forward(x, params, *, heads, causal,
                  tile_q=256, tile_kv=256, compute_dtype=jnp.bfloat16):
    B, S, D = x.shape
    assert D % heads == 0
    hd = D // heads
    mlp = params["w1"].shape[1]
    tq = min(tile_q, S)
    tkv = min(tile_kv, S)
    assert S % tq == 0 and S % tkv == 0
    nq = S // tq
    nkv = S // tkv
    cdt = compute_dtype
    vmem_limit = 48 * 1024 * 1024   # fits all generations incl. v7x (64 MiB)

    # bf16 matmul operands (f32 accumulation happens in-kernel)
    qkv_w = params["qkv_w"].astype(cdt)                       # (D, 3D)
    wo = params["out_w"].reshape(heads, hd, D).astype(cdt)    # (heads, hd, D)
    w1 = params["w1"].astype(cdt)                             # (D, mlp)
    w2 = params["w2"].astype(cdt)                             # (mlp, D)

    # ---- kernel 1: LN + QKV projection -> head-major q/k/v in bf16 ----
    qkv_call = pl.pallas_call(
        functools.partial(qkv_kernel, heads=heads, compute_dtype=cdt),
        grid=(B, nq),
        in_specs=[
            pl.BlockSpec((1, tq, D), lambda b, i: (b, i, 0)),
            pl.BlockSpec((1, D), lambda b, i: (0, 0)),
            pl.BlockSpec((1, D), lambda b, i: (0, 0)),
            pl.BlockSpec((D, 3 * D), lambda b, i: (0, 0)),
        ],
        out_specs=[pl.BlockSpec((1, heads, tq, hd),
                                lambda b, i: (b, 0, i, 0))] * 3,
        out_shape=[jax.ShapeDtypeStruct((B, heads, S, hd), cdt)] * 3,
        compiler_params=pltpu.CompilerParams(
            dimension_semantics=("parallel", "parallel"),
            vmem_limit_bytes=vmem_limit),
        cost_estimate=pl.CostEstimate(
            flops=int(2 * B * S * D * 3 * D),
            transcendentals=int(B * S),
            bytes_accessed=int(x.size * x.dtype.itemsize + qkv_w.size * 2
                               + 3 * B * S * D * 2)),
    )
    q, k, v = qkv_call(x, params["attn_norm_g"], params["attn_norm_b"], qkv_w)

    # ---- kernel 2: flash attention + out_proj + FFN + final LN ----
    flops2 = int(4 * B * heads * S * S * hd     # q@k^T and p@v
                 + 2 * B * S * D * D            # out_proj
                 + 4 * B * S * D * mlp)         # FFN
    bytes2 = int(2 * B * S * D * x.dtype.itemsize
                 + 3 * B * heads * S * hd * 2
                 + (wo.size + w1.size + w2.size) * 2)
    attn_call = pl.pallas_call(
        functools.partial(attn_ffn_kernel, causal=causal, compute_dtype=cdt),
        grid=(B, nq, nkv),
        in_specs=[
            pl.BlockSpec((1, tq, D), lambda b, i, j: (b, i, 0)),             # x (residual)
            pl.BlockSpec((1, heads, tq, hd), lambda b, i, j: (b, 0, i, 0)),  # q
            pl.BlockSpec((1, heads, tkv, hd), lambda b, i, j: (b, 0, j, 0)), # k
            pl.BlockSpec((1, heads, tkv, hd), lambda b, i, j: (b, 0, j, 0)), # v
            pl.BlockSpec((heads, hd, D), lambda b, i, j: (0, 0, 0)),         # out_w
            pl.BlockSpec((1, D), lambda b, i, j: (0, 0)),                    # out_b
            pl.BlockSpec((1, D), lambda b, i, j: (0, 0)),                    # ffn_norm_g
            pl.BlockSpec((1, D), lambda b, i, j: (0, 0)),                    # ffn_norm_b
            pl.BlockSpec((D, mlp), lambda b, i, j: (0, 0)),                  # w1
            pl.BlockSpec((1, mlp), lambda b, i, j: (0, 0)),                  # b1
            pl.BlockSpec((mlp, D), lambda b, i, j: (0, 0)),                  # w2
            pl.BlockSpec((1, D), lambda b, i, j: (0, 0)),                    # b2
            pl.BlockSpec((1, D), lambda b, i, j: (0, 0)),                    # final_norm_g
            pl.BlockSpec((1, D), lambda b, i, j: (0, 0)),                    # final_norm_b
        ],
        out_specs=pl.BlockSpec((1, tq, D), lambda b, i, j: (b, i, 0)),
        out_shape=jax.ShapeDtypeStruct((B, S, D), x.dtype),
        scratch_shapes=[
            pltpu.VMEM((heads, tq, 1), jnp.float32),   # running max
            pltpu.VMEM((heads, tq, 1), jnp.float32),   # running denom
            pltpu.VMEM((heads, tq, hd), jnp.float32),  # output accumulator
        ],
        compiler_params=pltpu.CompilerParams(
            dimension_semantics=("parallel", "parallel", "arbitrary"),
            vmem_limit_bytes=vmem_limit),
        cost_estimate=pl.CostEstimate(
            flops=flops2,
            transcendentals=int(B * heads * S * S + B * S * mlp),
            bytes_accessed=bytes2),
    )
    return attn_call(x, q, k, v, wo, params["out_b"],
                     params["ffn_norm_g"], params["ffn_norm_b"],
                     w1, params["b1"], w2, params["b2"],
                     params["final_norm_g"], params["final_norm_b"])


# ---------------------------------------------------------------------------
# Pure-JAX reference (f32) for a correctness check
# ---------------------------------------------------------------------------
def layer_reference(x, params, *, heads, causal):
    B, S, D = x.shape
    hd = D // heads

    def ln(t, g, b, eps=1e-5):
        mu = jnp.mean(t, -1, keepdims=True)
        var = jnp.mean((t - mu) ** 2, -1, keepdims=True)
        return (t - mu) * jax.lax.rsqrt(var + eps) * g + b

    xn = ln(x, params["attn_norm_g"], params["attn_norm_b"])
    qkv = xn @ params["qkv_w"]
    qkv = qkv.reshape(B, S, 3, heads, hd)
    q = jnp.transpose(qkv[:, :, 0], (0, 2, 1, 3))
    k = jnp.transpose(qkv[:, :, 1], (0, 2, 1, 3))
    v = jnp.transpose(qkv[:, :, 2], (0, 2, 1, 3))
    s = jnp.einsum("bhqd,bhkd->bhqk", q, k) / math.sqrt(hd)
    if causal:
        mask = jnp.tril(jnp.ones((S, S), bool))
        s = jnp.where(mask, s, -jnp.inf)
    p = jax.nn.softmax(s, axis=-1)
    a = jnp.einsum("bhqk,bhkd->bhqd", p, v)
    a = jnp.transpose(a, (0, 2, 1, 3)).reshape(B, S, D)
    a = a @ params["out_w"] + params["out_b"][0]
    x1 = a + x
    yn = ln(x1, params["ffn_norm_g"], params["ffn_norm_b"])
    h1 = yn @ params["w1"] + params["b1"][0]
    h1 = 0.5 * h1 * (1.0 + jax.lax.erf(h1 / math.sqrt(2.0)))
    ff = h1 @ params["w2"] + params["b2"][0]
    x2 = ff + x1
    return ln(x2, params["final_norm_g"], params["final_norm_b"])


# ---------------------------------------------------------------------------
# Deterministic parameter init (synthetic, matches module's shapes)
# ---------------------------------------------------------------------------
def make_params(key, D, mlp_dim):
    ks = jax.random.split(key, 6)
    std = 0.02
    f32 = jnp.float32
    return {
        "attn_norm_g": jnp.ones((1, D), f32),
        "attn_norm_b": jnp.zeros((1, D), f32),
        "qkv_w": std * jax.random.normal(ks[0], (D, 3 * D), f32),
        "out_w": std * jax.random.normal(ks[1], (D, D), f32),
        "out_b": std * jax.random.normal(ks[2], (1, D), f32),
        "ffn_norm_g": jnp.ones((1, D), f32),
        "ffn_norm_b": jnp.zeros((1, D), f32),
        "w1": std * jax.random.normal(ks[3], (D, mlp_dim), f32),
        "b1": std * jax.random.normal(ks[4], (1, mlp_dim), f32),
        "w2": std * jax.random.normal(ks[5], (mlp_dim, D), f32),
        "b2": jnp.zeros((1, D), f32),
        "final_norm_g": jnp.ones((1, D), f32),
        "final_norm_b": jnp.zeros((1, D), f32),
    }


if __name__ == "__main__":
    B, S, D, HEADS, MLP = 2, 8, 32, 2, 64
    key = jax.random.PRNGKey(0)
    kx, kp = jax.random.split(key)

    x = jax.random.normal(kx, (B, S, D), jnp.float32)
    params = make_params(kp, D, MLP)

    out = layer_forward(x, params, heads=HEADS, causal=True)
    out = jax.block_until_ready(out)

    assert out.shape == (B, S, D)
    assert bool(jnp.all(jnp.isfinite(out)))

    ref = layer_reference(x, params, heads=HEADS, causal=True)
    err = float(jnp.max(jnp.abs(out.astype(jnp.float32) - ref)))
    assert err < 1e-1, f"max abs err {err}"

    print("KERNEL_OK")
</pallas_src>

<mosaic_0001>
module attributes {stable_mosaic.version = 11 : i64} {
  func.func @qkv_kernel(%arg0: i32, %arg1: i32, %arg2: memref<1x8x32xf32, #tpu.memory_space<vmem>>, %arg3: memref<1x32xf32, #tpu.memory_space<vmem>>, %arg4: memref<1x32xf32, #tpu.memory_space<vmem>>, %arg5: memref<32x96xbf16, #tpu.memory_space<vmem>>, %arg6: memref<1x2x8x16xbf16, #tpu.memory_space<vmem>>, %arg7: memref<1x2x8x16xbf16, #tpu.memory_space<vmem>>, %arg8: memref<1x2x8x16xbf16, #tpu.memory_space<vmem>>) attributes {dimension_semantics = [#tpu.dimension_semantics<parallel>, #tpu.dimension_semantics<parallel>], iteration_bounds = array<i64: 2, 1>, scalar_prefetch = 0 : i64, scratch_operands = 0 : i64, tpu.core_type = #tpu.core_type<tc>, window_params = [{transform_indices = @transform_0, window_bounds = array<i64: 1, 8, 32>}, {pipeline_mode = #tpu.pipeline_mode<synchronous>, transform_indices = @transform_1, window_bounds = array<i64: 1, 32>}, {pipeline_mode = #tpu.pipeline_mode<synchronous>, transform_indices = @transform_2, window_bounds = array<i64: 1, 32>}, {pipeline_mode = #tpu.pipeline_mode<synchronous>, transform_indices = @transform_3, window_bounds = array<i64: 32, 96>}, {transform_indices = @transform_4, window_bounds = array<i64: 1, 2, 8, 16>}, {transform_indices = @transform_5, window_bounds = array<i64: 1, 2, 8, 16>}, {transform_indices = @transform_6, window_bounds = array<i64: 1, 2, 8, 16>}]} {
    %c0 = arith.constant 0 : index
    %c0_0 = arith.constant 0 : index
    %c0_1 = arith.constant 0 : index
    %0 = vector.load %arg2[%c0, %c0_0, %c0_1] : memref<1x8x32xf32, #tpu.memory_space<vmem>>, vector<1x8x32xf32>
    %1 = vector.shape_cast %0 : vector<1x8x32xf32> to vector<8x32xf32>
    %c0_2 = arith.constant 0 : index
    %c0_3 = arith.constant 0 : index
    %2 = vector.load %arg3[%c0_2, %c0_3] : memref<1x32xf32, #tpu.memory_space<vmem>>, vector<1x32xf32>
    %3 = vector.shape_cast %2 : vector<1x32xf32> to vector<32xf32>
    %c0_4 = arith.constant 0 : index
    %c0_5 = arith.constant 0 : index
    %4 = vector.load %arg4[%c0_4, %c0_5] : memref<1x32xf32, #tpu.memory_space<vmem>>, vector<1x32xf32>
    %5 = vector.shape_cast %4 : vector<1x32xf32> to vector<32xf32>
    %cst = arith.constant dense<0.000000e+00> : vector<8xf32>
    %6 = vector.multi_reduction <add>, %1, %cst [1] : vector<8x32xf32> to vector<8xf32>
    %7 = vector.shape_cast %6 : vector<8xf32> to vector<8x1xf32>
    %cst_6 = arith.constant 3.125000e-02 : f32
    %8 = vector.broadcast %cst_6 : f32 to vector<8x1xf32>
    %9 = arith.mulf %7, %8 : vector<8x1xf32>
    %10 = vector.broadcast %9 : vector<8x1xf32> to vector<8x32xf32>
    %11 = arith.subf %1, %10 : vector<8x32xf32>
    %12 = arith.mulf %11, %11 : vector<8x32xf32>
    %cst_7 = arith.constant dense<0.000000e+00> : vector<8xf32>
    %13 = vector.multi_reduction <add>, %12, %cst_7 [1] : vector<8x32xf32> to vector<8xf32>
    %14 = vector.shape_cast %13 : vector<8xf32> to vector<8x1xf32>
    %cst_8 = arith.constant 3.125000e-02 : f32
    %15 = vector.broadcast %cst_8 : f32 to vector<8x1xf32>
    %16 = arith.mulf %14, %15 : vector<8x1xf32>
    %cst_9 = arith.constant 9.99999974E-6 : f32
    %17 = vector.broadcast %cst_9 : f32 to vector<8x1xf32>
    %18 = arith.addf %16, %17 : vector<8x1xf32>
    %19 = math.rsqrt %18 : vector<8x1xf32>
    %20 = vector.broadcast %19 : vector<8x1xf32> to vector<8x32xf32>
    %21 = arith.mulf %11, %20 : vector<8x32xf32>
    %22 = vector.shape_cast %3 : vector<32xf32> to vector<1x32xf32>
    %23 = vector.broadcast %22 : vector<1x32xf32> to vector<8x32xf32>
    %24 = arith.mulf %21, %23 : vector<8x32xf32>
    %25 = vector.shape_cast %5 : vector<32xf32> to vector<1x32xf32>
    %26 = vector.broadcast %25 : vector<1x32xf32> to vector<8x32xf32>
    %27 = arith.addf %24, %26 : vector<8x32xf32>
    %28 = arith.truncf %27 : vector<8x32xf32> to vector<8x32xbf16>
    %c0_10 = arith.constant 0 : index
    %c0_11 = arith.constant 0 : index
    %29 = vector.load %arg5[%c0_10, %c0_11] : memref<32x96xbf16, #tpu.memory_space<vmem>>, vector<32x96xbf16>
    %cst_12 = arith.constant dense<0.000000e+00> : vector<8x96xf32>
    %30 = tpu.matmul %28, %29, %cst_12 {dimension_numbers = #tpu.dot_dimension_numbers<[1], [0], [0], [1], [0, 0, 1, 1], [], []>} : vector<8x32xbf16>, vector<32x96xbf16>, vector<8x96xf32> -> vector<8x96xf32>
    %31 = vector.extract_strided_slice %30 {offsets = [0, 0], sizes = [8, 16], strides = [1, 1]} : vector<8x96xf32> to vector<8x16xf32>
    %32 = arith.truncf %31 : vector<8x16xf32> to vector<8x16xbf16>
    %c0_13 = arith.constant 0 : index
    %c0_14 = arith.constant 0 : index
    %c0_15 = arith.constant 0 : index
    %c0_16 = arith.constant 0 : index
    %33 = vector.load %arg6[%c0_13, %c0_14, %c0_15, %c0_16] : memref<1x2x8x16xbf16, #tpu.memory_space<vmem>>, vector<1x1x8x16xbf16>
    %34 = vector.shape_cast %33 : vector<1x1x8x16xbf16> to vector<8x16xbf16>
    %35 = vector.shape_cast %32 : vector<8x16xbf16> to vector<1x1x8x16xbf16>
    tpu.vector_store %arg6[%c0_13, %c0_14, %c0_15, %c0_16], %35 {strides = array<i32>} : memref<1x2x8x16xbf16, #tpu.memory_space<vmem>>, vector<1x1x8x16xbf16>,
    %36 = vector.extract_strided_slice %30 {offsets = [0, 32], sizes = [8, 16], strides = [1, 1]} : vector<8x96xf32> to vector<8x16xf32>
    %37 = arith.truncf %36 : vector<8x16xf32> to vector<8x16xbf16>
    %c0_17 = arith.constant 0 : index
    %c0_18 = arith.constant 0 : index
    %c0_19 = arith.constant 0 : index
    %c0_20 = arith.constant 0 : index
    %38 = vector.load %arg7[%c0_17, %c0_18, %c0_19, %c0_20] : memref<1x2x8x16xbf16, #tpu.memory_space<vmem>>, vector<1x1x8x16xbf16>
    %39 = vector.shape_cast %38 : vector<1x1x8x16xbf16> to vector<8x16xbf16>
    %40 = vector.shape_cast %37 : vector<8x16xbf16> to vector<1x1x8x16xbf16>
    tpu.vector_store %arg7[%c0_17, %c0_18, %c0_19, %c0_20], %40 {strides = array<i32>} : memref<1x2x8x16xbf16, #tpu.memory_space<vmem>>, vector<1x1x8x16xbf16>,
    %41 = vector.extract_strided_slice %30 {offsets = [0, 64], sizes = [8, 16], strides = [1, 1]} : vector<8x96xf32> to vector<8x16xf32>
    %42 = arith.truncf %41 : vector<8x16xf32> to vector<8x16xbf16>
    %c0_21 = arith.constant 0 : index
    %c0_22 = arith.constant 0 : index
    %c0_23 = arith.constant 0 : index
    %c0_24 = arith.constant 0 : index
    %43 = vector.load %arg8[%c0_21, %c0_22, %c0_23, %c0_24] : memref<1x2x8x16xbf16, #tpu.memory_space<vmem>>, vector<1x1x8x16xbf16>
    %44 = vector.shape_cast %43 : vector<1x1x8x16xbf16> to vector<8x16xbf16>
    %45 = vector.shape_cast %42 : vector<8x16xbf16> to vector<1x1x8x16xbf16>
    tpu.vector_store %arg8[%c0_21, %c0_22, %c0_23, %c0_24], %45 {strides = array<i32>} : memref<1x2x8x16xbf16, #tpu.memory_space<vmem>>, vector<1x1x8x16xbf16>,
    %46 = vector.extract_strided_slice %30 {offsets = [0, 16], sizes = [8, 16], strides = [1, 1]} : vector<8x96xf32> to vector<8x16xf32>
    %47 = arith.truncf %46 : vector<8x16xf32> to vector<8x16xbf16>
    %c0_25 = arith.constant 0 : index
    %c1 = arith.constant 1 : index
    %c0_26 = arith.constant 0 : index
    %c0_27 = arith.constant 0 : index
    %48 = vector.load %arg6[%c0_25, %c1, %c0_26, %c0_27] : memref<1x2x8x16xbf16, #tpu.memory_space<vmem>>, vector<1x1x8x16xbf16>
    %49 = vector.shape_cast %48 : vector<1x1x8x16xbf16> to vector<8x16xbf16>
    %50 = vector.shape_cast %47 : vector<8x16xbf16> to vector<1x1x8x16xbf16>
    tpu.vector_store %arg6[%c0_25, %c1, %c0_26, %c0_27], %50 {strides = array<i32>} : memref<1x2x8x16xbf16, #tpu.memory_space<vmem>>, vector<1x1x8x16xbf16>,
    %51 = vector.extract_strided_slice %30 {offsets = [0, 48], sizes = [8, 16], strides = [1, 1]} : vector<8x96xf32> to vector<8x16xf32>
    %52 = arith.truncf %51 : vector<8x16xf32> to vector<8x16xbf16>
    %c0_28 = arith.constant 0 : index
    %c1_29 = arith.constant 1 : index
    %c0_30 = arith.constant 0 : index
    %c0_31 = arith.constant 0 : index
    %53 = vector.load %arg7[%c0_28, %c1_29, %c0_30, %c0_31] : memref<1x2x8x16xbf16, #tpu.memory_space<vmem>>, vector<1x1x8x16xbf16>
    %54 = vector.shape_cast %53 : vector<1x1x8x16xbf16> to vector<8x16xbf16>
    %55 = vector.shape_cast %52 : vector<8x16xbf16> to vector<1x1x8x16xbf16>
    tpu.vector_store %arg7[%c0_28, %c1_29, %c0_30, %c0_31], %55 {strides = array<i32>} : memref<1x2x8x16xbf16, #tpu.memory_space<vmem>>, vector<1x1x8x16xbf16>,
    %56 = vector.extract_strided_slice %30 {offsets = [0, 80], sizes = [8, 16], strides = [1, 1]} : vector<8x96xf32> to vector<8x16xf32>
    %57 = arith.truncf %56 : vector<8x16xf32> to vector<8x16xbf16>
    %c0_32 = arith.constant 0 : index
    %c1_33 = arith.constant 1 : index
    %c0_34 = arith.constant 0 : index
    %c0_35 = arith.constant 0 : index
    %58 = vector.load %arg8[%c0_32, %c1_33, %c0_34, %c0_35] : memref<1x2x8x16xbf16, #tpu.memory_space<vmem>>, vector<1x1x8x16xbf16>
    %59 = vector.shape_cast %58 : vector<1x1x8x16xbf16> to vector<8x16xbf16>
    %60 = vector.shape_cast %57 : vector<8x16xbf16> to vector<1x1x8x16xbf16>
    tpu.vector_store %arg8[%c0_32, %c1_33, %c0_34, %c0_35], %60 {strides = array<i32>} : memref<1x2x8x16xbf16, #tpu.memory_space<vmem>>, vector<1x1x8x16xbf16>,
    return
  }
  func.func @transform_0(%arg0: i32, %arg1: i32) -> (i32, i32, i32) {
    %c0_i32 = arith.constant 0 : i32
    %c0_i32_0 = arith.constant 0 : i32
    return %arg0, %arg1, %c0_i32 : i32, i32, i32
  }
  func.func @transform_1(%arg0: i32, %arg1: i32) -> (i32, i32) {
    %c0_i32 = arith.constant 0 : i32
    %c0_i32_0 = arith.constant 0 : i32
    %c0_i32_1 = arith.constant 0 : i32
    return %c0_i32, %c0_i32_0 : i32, i32
  }
  func.func @transform_2(%arg0: i32, %arg1: i32) -> (i32, i32) {
    %c0_i32 = arith.constant 0 : i32
    %c0_i32_0 = arith.constant 0 : i32
    %c0_i32_1 = arith.constant 0 : i32
    return %c0_i32, %c0_i32_0 : i32, i32
  }
  func.func @transform_3(%arg0: i32, %arg1: i32) -> (i32, i32) {
    %c0_i32 = arith.constant 0 : i32
    %c0_i32_0 = arith.constant 0 : i32
    %c0_i32_1 = arith.constant 0 : i32
    return %c0_i32, %c0_i32_0 : i32, i32
  }
  func.func @transform_4(%arg0: i32, %arg1: i32) -> (i32, i32, i32, i32) {
    %c0_i32 = arith.constant 0 : i32
    %c0_i32_0 = arith.constant 0 : i32
    %c0_i32_1 = arith.constant 0 : i32
    return %arg0, %c0_i32, %arg1, %c0_i32_0 : i32, i32, i32, i32
  }
  func.func @transform_5(%arg0: i32, %arg1: i32) -> (i32, i32, i32, i32) {
    %c0_i32 = arith.constant 0 : i32
    %c0_i32_0 = arith.constant 0 : i32
    %c0_i32_1 = arith.constant 0 : i32
    return %arg0, %c0_i32, %arg1, %c0_i32_0 : i32, i32, i32, i32
  }
  func.func @transform_6(%arg0: i32, %arg1: i32) -> (i32, i32, i32, i32) {
    %c0_i32 = arith.constant 0 : i32
    %c0_i32_0 = arith.constant 0 : i32
    %c0_i32_1 = arith.constant 0 : i32
    return %arg0, %c0_i32, %arg1, %c0_i32_0 : i32, i32, i32, i32
  }
}

</mosaic_0001>

<bundles_post_ra>
// kernel: tpu_custom_call.1
= control target key start
LH: loop header
LB: loop body
LE: loop exit
PB: predicated region body
PF: predicated region fallthrough
CT: control target
= control target key end

     0   :  { %s1386_s0 = inlined_call_operand.hbm [shape: f32[2,8,32], index: 0, kind: input, shape index: {}]   ;;  %s1387_s1 = inlined_call_operand.vmem [shape: f32[1,32], index: 1, kind: input, shape index: {}]   ;;  %s1388_s2 = inlined_call_operand.vmem [shape: f32[1,32], index: 2, kind: input, shape index: {}]   ;;  %s1389_s3 = inlined_call_operand.hbm [shape: bf16[32,96], index: 3, kind: input, shape index: {}]   ;;  %s1390_s4 = inlined_call_operand.hbm [shape: bf16[2,2,8,16], index: 4, kind: output, shape index: {0}]   ;;  %s1391_s5 = inlined_call_operand.hbm [shape: bf16[2,2,8,16], index: 5, kind: output, shape index: {1}]   ;;  %s1392_s6 = inlined_call_operand.hbm [shape: bf16[2,2,8,16], index: 6, kind: output, shape index: {2}]  }
   0x1   :  { %1399 = sst [smem:[#allocation15_spill]] %s1386_s0 }
   0x2   :  { %1400 = sst [smem:[#allocation16_spill]] %s1387_s1 }
   0x3   :  { %1401 = sst [smem:[#allocation17_spill]] %s1388_s2 }
   0x4   :  { %1402 = sst [smem:[#allocation18_spill]] %s1389_s3 }
   0x5   :  { %12 = vsyncpa [#allocation3], 0 }
   0x6   :  { %14 = vsyncpa [#allocation3 + $0x1], 0 }
   0x7   :  { %15 = vsyncpa [#allocation6], 0 }
   0x8   :  { %16 = vsyncpa [#allocation4], 0 }
   0x9   :  { %18 = vsyncpa [#allocation4 + $0x1], 0 }
   0xa   :  { %19 = vsyncpa [#allocation9], 0 }
   0xb   :  { %21 = vsyncpa [#allocation9 + $0x1], 0  ;;  %s1061_s21 = smov 0   ;;  %s1063_s22 = smov 0  }
   0xc   :  { %s1065_s23 = smov 0   ;;  %s1067_s24 = smov 0  }
   0xd   :  { %s1069_s25 = smov 0   ;;  %s1071_s26 = smov 0  }
   0xe LB: > { %s1092_s27 = sadd.s32 4294967295, %s1009_s26   ;;  %s1396_s28 = sadd.s32 4294967294, %s1009_s26   ;;  %s1009_s26 = sphi %s1071_s26, %s27_s26   ;;  %s1005_s25 = sphi %s1069_s25, %s1427_s25   ;;  %s1001_s24 = sphi %s1067_s24, %s1426_s24   ;;  %s997_s23 = sphi %s1065_s23, %s1425_s23   ;;  %s993_s22 = sphi %s1063_s22, %s1424_s22   ;;  %s989_s21 = sphi %s1061_s21, %s1423_s21  }
   0xf   : > { %p61_p0 = scmp.ne.s32.totalorder %s993_s22, %s989_s21  ;;  %p1393_p1 = scmp.eq.s32.totalorder %s1092_s27, 0 }
  0x10   : > { %p156_p3 = scmp.eq.s32.totalorder %s1396_s28, 1  ;;  %p662_p5 = scmp.ge.s32.totalorder %s1009_s26, 1 }
  0x11   : > { %p1103_p4 = por %p1393_p1, %p61_p0  ;;  %p219_p7 = scmp.lt.s32.totalorder %s1009_s26, 3 }
  0x12   : > { %p1108_p6 = por %p156_p3, %p61_p0  ;;  %s1011_s8 = smov [#allocation5]  }
  0x13   : > { %s1403_s29 = scalar_select %p1103_p4, 1, 0 }
  0x14   : > { %s1404_s30 = scalar_select %p1108_p6, 1, 0 }
  0x15   : > { %p1113_p8 = pnand %p662_p5, %p219_p7  ;;  %s237_s9 = sshll.u32 %s1011_s8, 4  ;;  %s238_s9 = int_to_ptr.vmem [resolvable:$true] %s237_s9 }
  0x16   : > { %s39_s11 = sadd.s32 1, %s1005_s25  ;;  %s1407_s3 = sld [smem:[#allocation18_spill]] }
  0x17   : > { %s1405_s7 = scalar_select %p1113_p8, 1, 0 }
  0x18   : > { %p720_p9 = pneg %p1113_p8 }
  0x1a   : > { %p1122_p11 = pnand %p720_p9, %p1393_p1 }
  0x1c   : > { %s805_s14 = scalar_lea.hbm %s1407_s3, 256  ;;  %p807_p13 = pneg %p1122_p11 }
  0x1d   : > { %p806_p12 = scmp.ne.s32.totalorder %s1407_s3, %s805_s14  ;;  %p812_p5 = scmp.lt.u32.totalorder %s805_s14, %s1407_s3 }
  0x1f   : > { %p808_p0 = pnand %p807_p13, %p806_p12 }
  0x21   : > { %p809_p3 = pneg %p808_p0 }
  0x23   : > { %p814_p7 = pnand %p812_p5, %p809_p3 }
  0x25   : > { %817 = shalt.err (!%p814_p7)
}
  0x26   : > { %s818_s19 = scalar_lea.vmem %s238_s9, 256  ;;  %p826_p2 = scmp.lt.s32.totalorder %s238_s9, %s238_s9 }
  0x27   : > { %p819_p9 = scmp.ne.s32.totalorder %s238_s9, %s818_s19  ;;  %p827_p6 = scmp.lt.s32.totalorder %s818_s19, %s818_s19 }
  0x29   : > { %p821_p10 = pnand %p819_p9, %p807_p13  ;;  %p828_p4 = por %p827_p6, %p826_p2 }
  0x2b   : > { %p822_p1 = pneg %p821_p10 }
  0x2d   : > { %p829_p8 = pnand %p828_p4, %p822_p1 }
  0x2f   : > { %832 = shalt.err (!%p829_p8)
}
  0x30   : > { %s1012_s20 = smov 64   ;;  %s1013_s8 = smov 4  }
  0x31   : > { %723 = dma.hbm_to_vmem [thread:$0]  (!%p1122_p11), %s1407_s3, 256, %s238_s9, [#allocation6], %s1012_s20, %s1012_s20, %s1013_s8  }
  0x32   : > { %p41_p1 = scmp.ge.s32.totalorder %s39_s11, 2  ;;  %s48_s14 = sadd.s32 1, %s997_s23 }
  0x33   : > { %p55_p2 = scmp.ne.s32.totalorder %s997_s23, %s993_s22  ;;  %p56_p4 = scmp.eq.s32.totalorder %s1009_s26, 0 }
  0x34   : > { %s1429_s11 = smov (%p41_p1, %s39_s11), 0  ;;  %p1409_p8 = scmp.eq.s32.totalorder %s1092_s27, 1 }
  0x35   : > { %p1149_p6 = por %p56_p4, %p55_p2  ;;  %s43_s10 = ssub.s32 %s1005_s25, %s1429_s11 }
  0x36   : > { %p1155_p10 = por %p1409_p8, %p55_p2  ;;  %p739_p12 = scmp.lt.s32.totalorder %s1009_s26, 2 }
  0x37   : > { %p46_p11 = scmp.eq.s32.totalorder %s43_s10, 0  ;;  %s251_s9 = sand.u32 1, %s997_s23  }
  0x38   : > { %s665_s17 = sshll.u32 %s251_s9, 3  ;;  %s666_s19 = sshll.u32 %s1005_s25, 7 }
  0x39   : > { %s1164_s18 = scalar_select %p46_p11, %s997_s23, %s48_s14  }
  0x3a   : > { %s1411_s0 = sld [smem:[#allocation15_spill]]  ;;  %s255_s13 = scalar_lea.vmem [#allocation2], %s665_s17 }
  0x3b   : > { %s263_s28 = sshll.u32 %s255_s13, 4  ;;  %p1176_p13 = pnand %p739_p12, %p1149_p6  ;;  %s1172_s28 = int_to_ptr.vmem [resolvable:$true] %s263_s28 }
  0x3c   : > { %s252_s14 = scalar_lea.sflag [#allocation3], %s251_s9 }
  0x3d   : > { %p835_p3 = pneg %p1176_p13 }
  0x40   : > { %s1170_s12 = scalar_lea.hbm %s1411_s0, %s666_s19  ;;  %s838_s20 = scalar_lea.hbm %s1411_s0, 256 }
  0x41   : > { %s833_s3 = scalar_lea.hbm %s1170_s12, 128  ;;  %p839_p9 = scmp.lt.u32.totalorder %s1170_s12, %s1411_s0 }
  0x42   : > { %p834_p0 = scmp.ne.s32.totalorder %s1170_s12, %s833_s3  ;;  %p840_p1 = scmp.lt.u32.totalorder %s838_s20, %s833_s3 }
  0x43   : > { %p842_p4 = scmp.lt.u32.totalorder %s833_s3, %s1170_s12 }
  0x44   : > { %p836_p5 = pnand %p835_p3, %p834_p0  ;;  %p841_p2 = por %p840_p1, %p839_p9 }
  0x46   : > { %p837_p7 = pneg %p836_p5  ;;  %p843_p6 = por %p842_p4, %p841_p2 }
  0x48   : > { %p844_p8 = pnand %p843_p6, %p837_p7 }
  0x4a   : > { %847 = shalt.err (!%p844_p8)
}
  0x4b   : > { %s848_s9 = scalar_lea.vmem %s1172_s28, 128  ;;  %s1014_s13 = smov [#allocation2]  }
  0x4c   : > { %p849_p12 = scmp.ne.s32.totalorder %s1172_s28, %s848_s9  ;;  %s853_s17 = sshll.u32 %s1014_s13, 4  ;;  %s854_s17 = int_to_ptr.vmem [resolvable:$false] %s853_s17 }
  0x4d   : > { %s855_s19 = scalar_lea.vmem %s854_s17, 256  ;;  %p856_p5 = scmp.lt.s32.totalorder %s1172_s28, %s854_s17 }
  0x4e   : > { %p851_p11 = pnand %p849_p12, %p835_p3  ;;  %p857_p9 = scmp.lt.s32.totalorder %s855_s19, %s848_s9 }
  0x50   : > { %p852_p0 = pneg %p851_p11  ;;  %p858_p1 = por %p857_p9, %p856_p5 }
  0x52   : > { %p859_p2 = pnand %p858_p1, %p852_p0 }
  0x54   : > { %862 = shalt.err (!%p859_p2)
}
  0x55   : > { %727 = dma.hbm_to_vmem [thread:$0]  (!%p1176_p13), %s1170_s12, 128, %s1172_s28, %s252_s14  }
  0x56   : > { %p1413_p7 = scmp.ne.s32.totalorder %s1405_s7, 0 }
  0x57   : > { %s1208_s3 = sand.u32 (!%p1413_p7), 1, %s993_s22   ;;  %p1414_p3 = scmp.ne.s32.totalorder (!%p1413_p7), %s1403_s29, 0 }
  0x58   : > { %272 = sbr.rel (%p1413_p7) target bundleno = 810 (0x32a), region = 36  ;;  %s1211_s20 = sshll.u32 (!%p1413_p7), %s1208_s3, 3 }
  0x59   : > { %s275_s15 = scalar_lea.sflag (!%p1413_p7), [#allocation3], %s1208_s3  ;;  %s278_s8 = scalar_lea.vmem (!%p1413_p7), [#allocation2], %s1211_s20 }
  0x5f   : > { %972 = dma.done.wait (%p1414_p3), %s275_s15, 128  }
  0x60   : > { %974 = vsyncadd (%p1414_p3), %s275_s15, 4294967168  ;;  %p1415_p13 = scmp.eq.s32.totalorder %s1092_s27, 0 }
  0x62   : > { %976 = dma.done.wait (%p1415_p13), [#allocation6], 256   ;;  %p1416_p4 = pmov %p1415_p13 }
  0x63   : > { %vm325_vm0 = vcmask 261120   ;;  %v322_v0 = vld [vmem:[%s278_s8] sm:$0xff]  ;;  %v801_v7 = vld [vmem:[#allocation5] sm:$0xff]   ;;  %v1015_v8 = vmov 0.0   ;;  %vm1016_vm1 = vmmov 0   ;;  %v802_v9 = vld [vmem:[#allocation5 + $0x8] sm:$0xff]  }
  0x64   : > { %978 = vsyncadd (%p1416_p4), [#allocation6], 4294967040  ;;  %v326_v1 = vsel %vm325_vm0, %v322_v0, 0.0  ;;  %700 = vmatprep.subr.bf16.mxu0 %v1015_v8  ;;  %704 = vmatprep.mubr.msk.bf16.mxu0 %vm1016_vm1, %v1015_v8  ;;  %s1417_s1 = sld [smem:[#allocation16_spill]]  ;;  %s1418_s2 = sld [smem:[#allocation17_spill]]  ;;  %vm414_vm2 = vcmask 125952  }
  0x65   : > { %327 = vadd.xlane.f32.xlu0 %v326_v1  ;;  %701 = vmatpush3.bf16.msra.mxu0 %v801_v7  ;;  %s1397_s10 = smov 64   ;;  %s1018_s14 = smov 96  }
  0x66   : > { %702 = vmatprep.subr.bf16.mxu0 %v1015_v8  ;;  %s1234_s9 = scalar_lea.vmem [#allocation7], %s1211_s20  ;;  %s1019_s13 = smov 80  }
  0x67   : > { %s1020_s17 = smov 112   ;;  %s1021_s19 = smov 48  }
  0x68   : > { %s313_s15 = scalar_lea.vmem [#allocation8], %s1211_s20  ;;  %s447_s28 = sand.u32 1, %s1092_s27  }
  0x69   : > { %703 = vmatpush3.bf16.msra.mxu0 %v802_v9  ;;  %s484_s8 = sshll.u32 %s313_s15, 4  ;;  %s1241_s29 = sshll.u32 %s1001_s24, 7  ;;  %s1248_s8 = int_to_ptr.vmem [resolvable:$true] %s484_s8 }
  0x6a   : > { %v673_v14 = vld [vmem:[%s1417_s1] ss:$0 sm:$0xff]  ;;  %s1244_s7 = scalar_lea.vmem [#allocation10], %s1211_s20  ;;  %s467_s12 = sshll.u32 %s1234_s9, 4  ;;  %s1259_s12 = int_to_ptr.vmem [resolvable:$true] %s467_s12 }
  0x6b   : > { %v674_v16 = vld [vmem:[%s1418_s2] ss:$0 sm:$0xff]  ;;  %s1261_s24 = scalar_lea.sflag [#allocation9], %s447_s28  ;;  %s863_s20 = scalar_lea.vmem %s1248_s8, 128 }
  0x6c   : > { %p864_p6 = scmp.ne.s32.totalorder %s1248_s8, %s863_s20 }
  0x6e   : > { %p865_p8 = pnand %p864_p6, %p1155_p10 }
  0x70   : > { %p866_p12 = pneg %p865_p8 }
  0xf2   : > { %v328_v2 = vpop.xlane.xlu0 %327 }
  0xf3   : > { %v329_v3 = vmul.f32 0.03125, %v328_v2 }
  0xf5   : > { %v330_v4 = vsub.f32 %v322_v0, %v329_v3 }
  0xf7   : > { %v331_v5 = vmul.f32 %v330_v4, %v330_v4 }
  0xf9   : > { %v332_v6 = vsel %vm325_vm0, %v331_v5, 0.0 }
  0xfa   : > { %333 = vadd.xlane.f32.xlu0 %v332_v6 }
 0x187   : > { %v334_v10 = vpop.xlane.xlu0 %333 }
 0x188   : > { %v335_v11 = vmul.f32 0.03125, %v334_v10 }
 0x18a   : > { %v336_v12 = vadd.f32 1e-05, %v335_v11 }
 0x18c   : > { %803 = vrsqrt.f32 %v336_v12 }
 0x196   : > { %v804_v13 = vpop.eup %803 }
 0x197   : > { %v338_v15 = vmul.f32 %v804_v13, %v330_v4 }
 0x199   : > { %v345_v17 = vmul.f32 %v673_v14, %v338_v15 }
 0x19b   : > { %v352_v18 = vadd.f32 %v674_v16, %v345_v17 }
 0x19d   : > { %v353_v19 = vpack.c.bf16 %v352_v18, %v352_v18 }
 0x19f   : > { %705 = vmatmul.mubr.msk.bf16.vlgmr.msra.gmra.mrb[0].mxu0 %vm325_vm0, %v353_v19 }
 0x272   : > { %v407_v20 = vpop.f32.mrb[0].mxu0 }
 0x273   : > { %v413_v21 = vpack.c.bf16 %v407_v20, %v407_v20  ;;  %v706_v22 = vpop.f32.mrb[1].mxu0 }
 0x274   : > { %v410_v23 = vpop.f32.mrb[2].mxu0 }
 0x275   : > { %423 = vrot.lane.b32.xlu0 %v413_v21, %s1397_s10  ;;  %419 = vrot.lane.b32.xlu1 %v413_v21, %s1018_s14  ;;  %v707_v24 = vpop.f32.mrb[3].mxu0  ;;  %415 = vst.msk [vmem:[%s1234_s9] sm:$0xf] %vm414_vm2, %v413_v21 }
 0x279   : > { %432 = vrot.lane.b32.xlu1 %v413_v21, %s1019_s13  ;;  %s1256_s13 = scalar_lea.hbm %s1391_s5, %s1241_s29 }
 0x27d   : > { %427 = vrot.lane.b32.xlu1 %v413_v21, %s1020_s17  ;;  %s1022_s17 = smov [#allocation8]  }
 0x281   : > { %437 = vrot.lane.b32.xlu1 %v413_v21, %s1021_s19  ;;  %s867_s19 = sshll.u32 %s1022_s17, 4  ;;  %s868_s19 = int_to_ptr.vmem [resolvable:$false] %s867_s19 }
 0x282   : > { %s869_s10 = scalar_lea.vmem %s868_s19, 256  ;;  %p870_p11 = scmp.lt.s32.totalorder %s1248_s8, %s868_s19 }
 0x283   : > { %p871_p0 = scmp.lt.s32.totalorder %s869_s10, %s863_s20 }
 0x285   : > { %p872_p5 = por %p871_p0, %p870_p11 }
 0x287   : > { %p873_p9 = pnand %p872_p5, %p866_p12 }
 0x2e7   : > { %v424_v25 = vpop.permute.xlu0 %423  ;;  %v420_v26 = vpop.permute.xlu1 %419 }
 0x2e8   : > { %426 = vst.msk [vmem:[%s1244_s7] sm:$0xf] %vm414_vm2, %v424_v25  ;;  %422 = vst.msk [vmem:[%s313_s15] sm:$0xf] %vm414_vm2, %v420_v26 }
 0x2eb   : > { %v433_v27 = vpop.permute.xlu1 %432 }
 0x2ec   : > { %680 = vst.msk [vmem:[%s313_s15 + $0x4] sm:$0xf] %vm414_vm2, %v433_v27 }
 0x2ed   : > { %876 = shalt.err (!%p873_p9)
}
 0x2ee   : > { %s877_s15 = scalar_lea.hbm %s1256_s13, 128  ;;  %s881_s14 = scalar_lea.hbm %s1391_s5, 256 }
 0x2ef   : > { %p878_p1 = scmp.ne.s32.totalorder %s1256_s13, %s877_s15  ;;  %p882_p3 = scmp.lt.u32.totalorder %s1256_s13, %s1391_s5 }
 0x2f0   : > { %p883_p13 = scmp.lt.u32.totalorder %s881_s14, %s877_s15  ;;  %p885_p6 = scmp.lt.u32.totalorder %s877_s15, %s1256_s13 }
 0x2f1   : > { %p879_p2 = pnand %p878_p1, %p1155_p10 }
 0x2f2   : > { %p884_p4 = por %p883_p13, %p882_p3 }
 0x2f3   : > { %p880_p7 = pneg %p879_p2 }
 0x2f4   : > { %p886_p8 = por %p885_p6, %p884_p4 }
 0x2f6   : > { %p887_p12 = pnand %p886_p8, %p880_p7 }
 0x2f8   : > { %890 = shalt.err (!%p887_p12)
}
 0x2f9   : > { %s1023_s10 = smov 4   ;;  %s1419_s20 = smov 64   ;;  %v428_v28 = vpop.permute.xlu1 %427 }
 0x2fa   : > { %715 = dma.vmem_to_hbm [thread:$0]  (%p1155_p10), %s1248_s8, 128, %s1256_s13, %s1261_s24, %s1419_s20, %s1419_s20, %s1023_s10  }
 0x2fb   : > { %s1292_s27 = scalar_lea.hbm %s1390_s4, %s1241_s29  ;;  %s501_s14 = sshll.u32 %s1244_s7, 4  ;;  %679 = vst.msk [vmem:[%s1234_s9 + $0x4] sm:$0xf] %vm414_vm2, %v428_v28  ;;  %s1326_s14 = int_to_ptr.vmem [resolvable:$true] %s501_s14 }
 0x2fc   : > { %s443_s17 = scalar_lea.sflag [#allocation4], %s1208_s3  ;;  %s891_s19 = scalar_lea.vmem %s1259_s12, 128 }
 0x2fd   : > { %p892_p11 = scmp.ne.s32.totalorder %s1259_s12, %s891_s19  ;;  %s1024_s0 = smov [#allocation7]  }
 0x2fe   : > { %s895_s1 = sshll.u32 %s1024_s0, 4  ;;  %s896_s1 = int_to_ptr.vmem [resolvable:$false] %s895_s1 }
 0x2ff   : > { %p893_p0 = pnand %p892_p11, %p1155_p10  ;;  %s897_s2 = scalar_lea.vmem %s896_s1, 256 }
 0x300   : > { %p898_p9 = scmp.lt.s32.totalorder %s1259_s12, %s896_s1  ;;  %p899_p1 = scmp.lt.s32.totalorder %s897_s2, %s891_s19 }
 0x301   : > { %p894_p5 = pneg %p893_p0 }
 0x302   : > { %p900_p2 = por %p899_p1, %p898_p9 }
 0x304   : > { %p901_p7 = pnand %p900_p2, %p894_p5 }
 0x306   : > { %904 = shalt.err (!%p901_p7)
}
 0x307   : > { %s905_s9 = scalar_lea.hbm %s1292_s27, 128  ;;  %s909_s0 = scalar_lea.hbm %s1390_s4, 256 }
 0x308   : > { %p906_p3 = scmp.ne.s32.totalorder %s1292_s27, %s905_s9  ;;  %p910_p6 = scmp.lt.u32.totalorder %s1292_s27, %s1390_s4 }
 0x309   : > { %p911_p8 = scmp.lt.u32.totalorder %s909_s0, %s905_s9  ;;  %p913_p11 = scmp.lt.u32.totalorder %s905_s9, %s1292_s27 }
 0x30a   : > { %p907_p13 = pnand %p906_p3, %p1155_p10 }
 0x30b   : > { %p912_p12 = por %p911_p8, %p910_p6 }
 0x30c   : > { %p908_p4 = pneg %p907_p13 }
 0x30d   : > { %p914_p0 = por %p913_p11, %p912_p12 }
 0x30f   : > { %p915_p5 = pnand %p914_p0, %p908_p4 }
 0x311   : > { %918 = shalt.err (!%p915_p5)
}
 0x312   : > { %714 = dma.vmem_to_hbm [thread:$0]  (%p1155_p10), %s1259_s12, 128, %s1292_s27, %s443_s17, %s1419_s20, %s1419_s20, %s1023_s10   ;;  %v438_v29 = vpop.permute.xlu1 %437 }
 0x313   : > { %s1332_s19 = scalar_lea.hbm %s1392_s6, %s1241_s29  ;;  %681 = vst.msk [vmem:[%s1244_s7 + $0x4] sm:$0xf] %vm414_vm2, %v438_v29  ;;  %s919_s3 = scalar_lea.vmem %s1326_s14, 128 }
 0x314   : > { %p920_p9 = scmp.ne.s32.totalorder %s1326_s14, %s919_s3  ;;  %s1025_s12 = smov [#allocation10]  }
 0x315   : > { %s923_s27 = sshll.u32 %s1025_s12, 4  ;;  %s924_s27 = int_to_ptr.vmem [resolvable:$false] %s923_s27 }
 0x316   : > { %p921_p1 = pnand %p920_p9, %p1155_p10  ;;  %s925_s17 = scalar_lea.vmem %s924_s27, 256 }
 0x317   : > { %p926_p7 = scmp.lt.s32.totalorder %s1326_s14, %s924_s27  ;;  %p927_p3 = scmp.lt.s32.totalorder %s925_s17, %s919_s3 }
 0x318   : > { %p922_p2 = pneg %p921_p1 }
 0x319   : > { %p928_p13 = por %p927_p3, %p926_p7 }
 0x31b   : > { %p929_p4 = pnand %p928_p13, %p922_p2 }
 0x31d   : > { %932 = shalt.err (!%p929_p4)
}
 0x31e   : > { %s933_s29 = scalar_lea.hbm %s1332_s19, 128  ;;  %s937_s8 = scalar_lea.hbm %s1392_s6, 256 }
 0x31f   : > { %p934_p6 = scmp.ne.s32.totalorder %s1332_s19, %s933_s29  ;;  %p938_p11 = scmp.lt.u32.totalorder %s1332_s19, %s1392_s6 }
 0x320   : > { %p939_p0 = scmp.lt.u32.totalorder %s937_s8, %s933_s29  ;;  %p941_p9 = scmp.lt.u32.totalorder %s933_s29, %s1332_s19 }
 0x321   : > { %p935_p8 = pnand %p934_p6, %p1155_p10 }
 0x322   : > { %p940_p5 = por %p939_p0, %p938_p11 }
 0x323   : > { %p936_p12 = pneg %p935_p8 }
 0x324   : > { %p942_p1 = por %p941_p9, %p940_p5 }
 0x326   : > { %p943_p2 = pnand %p942_p1, %p936_p12 }
 0x328   : > { %946 = shalt.err (!%p943_p2)
}
 0x329   : > { %716 = dma.vmem_to_hbm [thread:$0]  (%p1155_p10), %s1326_s14, 128, %s1332_s19, %s1261_s24, %s1419_s20, %s1419_s20, %s1023_s10  }
 0x32a PF: > { %s516_s15 = sand.u32 1, %s989_s21   ;;  %p1420_p7 = scmp.ne.s32.totalorder %s1404_s30, 0 }
 0x32b   : > { %p1421_p3 = scmp.ge.s32.totalorder %s1009_s26, 2  ;;  %s517_s1 = scalar_lea.sflag [#allocation4], %s516_s15 }
 0x32d   : > { %p729_p13 = pnand %p1421_p3, %p1420_p7 }
 0x32f   : > { %980 = dma.done.wait (!%p729_p13), %s517_s1, 128  }
 0x330   : > { %982 = vsyncadd (!%p729_p13), %s517_s1, 4294967168  ;;  %s1422_s16 = sadd.s32 4294967294, %s1009_s26  }
 0x331   : > { %s525_s2 = sand.u32 1, %s1422_s16  }
 0x332   : > { %s526_s28 = scalar_lea.sflag [#allocation9], %s525_s2 }
 0x333   : > { %984 = dma.done.wait (!%p729_p13), %s526_s28, 256  }
 0x334   : > { %986 = vsyncadd (!%p729_p13), %s526_s28, 4294967040  ;;  %s27_s26 = sadd.s32 1, %s1009_s26   ;;  %s1423_s21 = smov %s993_s22 }
 0x335   : > { %p24_p10 = scmp.ge.s32.totalorder %s27_s26, 4   ;;  %s1424_s22 = smov %s997_s23 }
 0x336   : > { %s1425_s23 = smov %s1164_s18  ;;  %s1426_s24 = smov %s1005_s25 }
 0x337   : > { %s1427_s25 = smov %s1429_s11  ;;  %26 = sbr.rel (!%p24_p10) target bundleno = 14 (0xe), region = 120 }
 0x33e   :  { %540 = vsyncpa [#allocation3], 1 }
 0x33f   :  { %542 = vsyncpa [#allocation3 + $0x1], 1 }
 0x340   :  { %543 = vsyncpa [#allocation6], 1 }
 0x341   :  { %544 = vsyncpa [#allocation4], 1 }
 0x342   :  { %546 = vsyncpa [#allocation4 + $0x1], 1 }
 0x343   :  { %547 = vsyncpa [#allocation9], 1 }
 0x344   :  { %549 = vsyncpa [#allocation9 + $0x1], 1 }

</bundles_post_ra>
